<compile_context>
chip_gen: v7x
topology: tpu7x:2x2x1
jax: 0.10.0
libtpu: 0.0.40
codegen_flags: <defaults>
</compile_context>

<pallas_src>
import functools

import jax
import jax.numpy as jnp
from jax.experimental import pallas as pl
from jax.experimental.pallas import tpu as pltpu


def _prediction_mlp_kernel(x_ref, w1_ref, gamma_ref, beta_ref, w2_ref, b2_ref,
                           o_ref,
                           h_ref, sum_ref, sq_ref, scale_ref, shift_ref,
                           *, n_true):
    phase = pl.program_id(0)   # 0: first matmul + batch stats, 1: BN/ReLU/W2
    j = pl.program_id(1)       # batch tile index

    @pl.when(jnp.logical_and(phase == 0, j == 0))
    def _init():
        sum_ref[...] = jnp.zeros_like(sum_ref)
        sq_ref[...] = jnp.zeros_like(sq_ref)

    @pl.when(phase == 0)
    def _phase0():
        # layer1 Linear.  b1 is dropped: training-mode BatchNorm subtracts the
        # batch mean, so the bias cancels exactly.
        h = jnp.dot(x_ref[...], w1_ref[...],
                    preferred_element_type=jnp.float32)      # [TN, hidden]
        h_ref[j] = h
        # Per-feature sum / sum-of-squares via the MXU (avoids a long XLU
        # cross-sublane reduction while the MXU is otherwise idle).
        tn = h.shape[0]
        ones = jnp.ones((1, tn), jnp.float32)
        sum_ref[...] += jnp.dot(ones, h, preferred_element_type=jnp.float32)
        sq_ref[...] += jnp.dot(ones, h * h, preferred_element_type=jnp.float32)

    @pl.when(phase == 1)
    def _phase1():
        @pl.when(j == 0)
        def _finalize_stats():
            inv_n = jnp.float32(1.0 / n_true)
            mean = sum_ref[...] * inv_n
            var = sq_ref[...] * inv_n - mean * mean          # biased variance
            scale = gamma_ref[...] * jax.lax.rsqrt(var + 1e-5)
            scale_ref[...] = scale
            shift_ref[...] = beta_ref[...] - mean * scale

        h = h_ref[j]                                         # [TN, hidden] f32
        hn = jnp.maximum(h * scale_ref[...] + shift_ref[...], 0.0)
        out = jnp.dot(hn.astype(w2_ref.dtype), w2_ref[...],
                      preferred_element_type=jnp.float32)
        o_ref[...] = out + b2_ref[...]


def _round_up(v, m):
    return (v + m - 1) // m * m


def prediction_mlp(x, w1, b1, gamma, beta, w2, b2, *, tile_n=256,
                   matmul_dtype=jnp.float32):
    """x: [N, in_dim].  Weights pre-transposed to [in, out].  Returns [N, out]."""
    del b1  # cancelled exactly by the training-mode BatchNorm mean subtraction
    n, in_dim = x.shape
    hidden = w1.shape[1]
    out_dim = w2.shape[1]

    # Lane-dense padding: feature dims -> multiples of 128, batch -> multiple
    # of the tile size (tile a multiple of 8 sublanes).
    in_p = _round_up(in_dim, 128)
    hid_p = _round_up(hidden, 128)
    out_p = _round_up(out_dim, 128)
    tn = min(tile_n, _round_up(n, 8))
    n_p = _round_up(n, tn)
    num_tiles = n_p // tn

    xp = jnp.zeros((n_p, in_p), matmul_dtype).at[:n, :in_dim].set(
        x.astype(matmul_dtype))
    w1p = jnp.zeros((in_p, hid_p), matmul_dtype).at[:in_dim, :hidden].set(
        w1.astype(matmul_dtype))
    w2p = jnp.zeros((hid_p, out_p), matmul_dtype).at[:hidden, :out_dim].set(
        w2.astype(matmul_dtype))
    gp = jnp.zeros((1, hid_p), jnp.float32).at[0, :hidden].set(gamma)
    bep = jnp.zeros((1, hid_p), jnp.float32).at[0, :hidden].set(beta)
    b2p = jnp.zeros((1, out_p), jnp.float32).at[0, :out_dim].set(b2)

    kernel = functools.partial(_prediction_mlp_kernel, n_true=float(n))

    itemsize = jnp.dtype(matmul_dtype).itemsize
    flops = 2 * n_p * in_p * hid_p + 2 * n_p * hid_p * out_p + 4 * n_p * hid_p
    bytes_accessed = (itemsize * (n_p * in_p + in_p * hid_p + hid_p * out_p)
                      + 4 * (n_p * out_p + 3 * hid_p + out_p))

    out_padded = pl.pallas_call(
        kernel,
        out_shape=jax.ShapeDtypeStruct((n_p, out_p), jnp.float32),
        grid_spec=pltpu.PrefetchScalarGridSpec(
            num_scalar_prefetch=0,
            grid=(2, num_tiles),
            in_specs=[
                # x is only needed in phase 0; pin phase 1 to block 0 so the
                # pipeline does not re-stream it from HBM.
                pl.BlockSpec((tn, in_p), lambda p, j: ((1 - p) * j, 0)),
                pl.BlockSpec((in_p, hid_p), lambda p, j: (0, 0)),   # W1 resident
                pl.BlockSpec((1, hid_p), lambda p, j: (0, 0)),      # gamma
                pl.BlockSpec((1, hid_p), lambda p, j: (0, 0)),      # beta
                pl.BlockSpec((hid_p, out_p), lambda p, j: (0, 0)),  # W2 resident
                pl.BlockSpec((1, out_p), lambda p, j: (0, 0)),      # b2
            ],
            # Output is only written in phase 1; during phase 0 keep pointing
            # at block 0 (stays resident, never written back) so no garbage or
            # redundant HBM writes happen.
            out_specs=pl.BlockSpec((tn, out_p), lambda p, j: (p * j, 0)),
            scratch_shapes=[
                pltpu.VMEM((num_tiles, tn, hid_p), jnp.float32),  # staged h
                pltpu.VMEM((1, hid_p), jnp.float32),              # sum
                pltpu.VMEM((1, hid_p), jnp.float32),              # sum of sq
                pltpu.VMEM((1, hid_p), jnp.float32),              # BN scale
                pltpu.VMEM((1, hid_p), jnp.float32),              # BN shift
            ],
        ),
        compiler_params=pltpu.CompilerParams(
            dimension_semantics=("arbitrary", "arbitrary"),
            vmem_limit_bytes=64 * 1024 * 1024,
        ),
        cost_estimate=pl.CostEstimate(
            flops=flops, transcendentals=hid_p, bytes_accessed=bytes_accessed),
    )(xp, w1p, gp, bep, w2p, b2p)

    return out_padded[:n, :out_dim]


def init_params(key, in_dim):
    """PyTorch-default-style init.  Weights returned pre-transposed [in, out]."""
    out_dim = in_dim
    hidden_dim = in_dim // 4
    k1, k2, k3, k4 = jax.random.split(key, 4)

    bound1 = 1.0 / jnp.sqrt(in_dim)
    w1 = jax.random.uniform(k1, (in_dim, hidden_dim), jnp.float32,
                            minval=-bound1, maxval=bound1)
    b1 = jax.random.uniform(k2, (hidden_dim,), jnp.float32,
                            minval=-bound1, maxval=bound1)
    gamma = jnp.ones((hidden_dim,), jnp.float32)
    beta = jnp.zeros((hidden_dim,), jnp.float32)

    bound2 = 1.0 / jnp.sqrt(hidden_dim)
    w2 = jax.random.uniform(k3, (hidden_dim, out_dim), jnp.float32,
                            minval=-bound2, maxval=bound2)
    b2 = jax.random.uniform(k4, (out_dim,), jnp.float32,
                            minval=-bound2, maxval=bound2)
    return w1, b1, gamma, beta, w2, b2


def reference(x, w1, b1, gamma, beta, w2, b2):
    """Pure-JAX reference of the PyTorch forward (training-mode BatchNorm1d)."""
    h = x @ w1 + b1
    mean = jnp.mean(h, axis=0, keepdims=True)
    var = jnp.mean((h - mean) ** 2, axis=0, keepdims=True)
    h = (h - mean) / jnp.sqrt(var + 1e-5)
    h = h * gamma + beta
    h = jnp.maximum(h, 0.0)
    return h @ w2 + b2


if __name__ == "__main__":
    # Small shapes consistent with the module: in_dim=32 -> hidden=8, out=32.
    # tile_n=8 forces two batch tiles so the cross-tile BN path is exercised.
    batch, in_dim = 16, 32
    key = jax.random.PRNGKey(0)
    kx, kp = jax.random.split(key)
    x = jax.random.normal(kx, (batch, in_dim), jnp.float32)
    params = init_params(kp, in_dim)

    out = prediction_mlp(x, *params, tile_n=8)
    out = jax.block_until_ready(out)

    ref = reference(x, *params)
    assert out.shape == (batch, in_dim)
    assert jnp.allclose(out, ref, atol=1e-4, rtol=1e-4), "mismatch vs reference"

    print("KERNEL_OK")
</pallas_src>

<mosaic_0001>
module attributes {stable_mosaic.version = 11 : i64} {
  func.func @_prediction_mlp_kernel(%arg0: i32, %arg1: i32, %arg2: memref<8x128xf32, #tpu.memory_space<vmem>>, %arg3: memref<128x128xf32, #tpu.memory_space<vmem>>, %arg4: memref<1x128xf32, #tpu.memory_space<vmem>>, %arg5: memref<1x128xf32, #tpu.memory_space<vmem>>, %arg6: memref<128x128xf32, #tpu.memory_space<vmem>>, %arg7: memref<1x128xf32, #tpu.memory_space<vmem>>, %arg8: memref<8x128xf32, #tpu.memory_space<vmem>>, %arg9: memref<2x8x128xf32, #tpu.memory_space<vmem>>, %arg10: memref<1x128xf32, #tpu.memory_space<vmem>>, %arg11: memref<1x128xf32, #tpu.memory_space<vmem>>, %arg12: memref<1x128xf32, #tpu.memory_space<vmem>>, %arg13: memref<1x128xf32, #tpu.memory_space<vmem>>) attributes {dimension_semantics = [#tpu.dimension_semantics<arbitrary>, #tpu.dimension_semantics<arbitrary>], iteration_bounds = array<i64: 2, 2>, scalar_prefetch = 0 : i64, scratch_operands = 5 : i64, tpu.core_type = #tpu.core_type<tc>, window_params = [{transform_indices = @transform_0, window_bounds = array<i64: 8, 128>}, {pipeline_mode = #tpu.pipeline_mode<synchronous>, transform_indices = @transform_1, window_bounds = array<i64: 128, 128>}, {pipeline_mode = #tpu.pipeline_mode<synchronous>, transform_indices = @transform_2, window_bounds = array<i64: 1, 128>}, {pipeline_mode = #tpu.pipeline_mode<synchronous>, transform_indices = @transform_3, window_bounds = array<i64: 1, 128>}, {pipeline_mode = #tpu.pipeline_mode<synchronous>, transform_indices = @transform_4, window_bounds = array<i64: 128, 128>}, {pipeline_mode = #tpu.pipeline_mode<synchronous>, transform_indices = @transform_5, window_bounds = array<i64: 1, 128>}, {transform_indices = @transform_6, window_bounds = array<i64: 8, 128>}]} {
    %c0_i32 = arith.constant 0 : i32
    %0 = arith.cmpi eq, %arg0, %c0_i32 : i32
    %c0_i32_0 = arith.constant 0 : i32
    %1 = arith.cmpi eq, %arg1, %c0_i32_0 : i32
    %2 = arith.andi %0, %1 : i1
    %3 = arith.extui %2 : i1 to i32
    %c0_i32_1 = arith.constant 0 : i32
    %4 = arith.cmpi ne, %3, %c0_i32_1 : i32
    scf.if %4 {
      %cst = arith.constant 0.000000e+00 : f32
      %11 = vector.broadcast %cst : f32 to vector<1x128xf32>
      %c0 = arith.constant 0 : index
      %c0_5 = arith.constant 0 : index
      %12 = vector.load %arg10[%c0, %c0_5] : memref<1x128xf32, #tpu.memory_space<vmem>>, vector<1x128xf32>
      tpu.vector_store %arg10[%c0, %c0_5], %11 {strides = array<i32>} : memref<1x128xf32, #tpu.memory_space<vmem>>, vector<1x128xf32>,
      %cst_6 = arith.constant 0.000000e+00 : f32
      %13 = vector.broadcast %cst_6 : f32 to vector<1x128xf32>
      %c0_7 = arith.constant 0 : index
      %c0_8 = arith.constant 0 : index
      %14 = vector.load %arg11[%c0_7, %c0_8] : memref<1x128xf32, #tpu.memory_space<vmem>>, vector<1x128xf32>
      tpu.vector_store %arg11[%c0_7, %c0_8], %13 {strides = array<i32>} : memref<1x128xf32, #tpu.memory_space<vmem>>, vector<1x128xf32>,
    } else {
    }
    %c0_i32_2 = arith.constant 0 : i32
    %5 = arith.cmpi eq, %arg0, %c0_i32_2 : i32
    %6 = arith.extui %5 : i1 to i32
    %c0_i32_3 = arith.constant 0 : i32
    %7 = arith.cmpi ne, %6, %c0_i32_3 : i32
    scf.if %7 {
      %c0 = arith.constant 0 : index
      %c0_5 = arith.constant 0 : index
      %11 = vector.load %arg2[%c0, %c0_5] : memref<8x128xf32, #tpu.memory_space<vmem>>, vector<8x128xf32>
      %c0_6 = arith.constant 0 : index
      %c0_7 = arith.constant 0 : index
      %12 = vector.load %arg3[%c0_6, %c0_7] : memref<128x128xf32, #tpu.memory_space<vmem>>, vector<128x128xf32>
      %cst = arith.constant dense<0.000000e+00> : vector<8x128xf32>
      %13 = tpu.matmul %11, %12, %cst {dimension_numbers = #tpu.dot_dimension_numbers<[1], [0], [0], [1], [0, 0, 1, 1], [], []>} : vector<8x128xf32>, vector<128x128xf32>, vector<8x128xf32> -> vector<8x128xf32>
      %14 = arith.index_cast %arg1 : i32 to index
      %c0_8 = arith.constant 0 : index
      %c0_9 = arith.constant 0 : index
      %15 = vector.load %arg9[%14, %c0_8, %c0_9] : memref<2x8x128xf32, #tpu.memory_space<vmem>>, vector<1x8x128xf32>
      %16 = vector.shape_cast %15 : vector<1x8x128xf32> to vector<8x128xf32>
      %17 = vector.shape_cast %13 : vector<8x128xf32> to vector<1x8x128xf32>
      tpu.vector_store %arg9[%14, %c0_8, %c0_9], %17 {strides = array<i32>} : memref<2x8x128xf32, #tpu.memory_space<vmem>>, vector<1x8x128xf32>,
      %cst_10 = arith.constant 1.000000e+00 : f32
      %18 = vector.broadcast %cst_10 : f32 to vector<1x8xf32>
      %c0_11 = arith.constant 0 : index
      %c0_12 = arith.constant 0 : index
      %19 = vector.load %arg10[%c0_11, %c0_12] : memref<1x128xf32, #tpu.memory_space<vmem>>, vector<1x128xf32>
      %cst_13 = arith.constant dense<0.000000e+00> : vector<1x128xf32>
      %20 = tpu.matmul %18, %13, %cst_13 {dimension_numbers = #tpu.dot_dimension_numbers<[1], [0], [0], [1], [0, 0, 1, 1], [], []>} : vector<1x8xf32>, vector<8x128xf32>, vector<1x128xf32> -> vector<1x128xf32>
      %21 = arith.addf %19, %20 : vector<1x128xf32>
      %c0_14 = arith.constant 0 : index
      %c0_15 = arith.constant 0 : index
      %22 = vector.load %arg10[%c0_14, %c0_15] : memref<1x128xf32, #tpu.memory_space<vmem>>, vector<1x128xf32>
      tpu.vector_store %arg10[%c0_14, %c0_15], %21 {strides = array<i32>} : memref<1x128xf32, #tpu.memory_space<vmem>>, vector<1x128xf32>,
      %c0_16 = arith.constant 0 : index
      %c0_17 = arith.constant 0 : index
      %23 = vector.load %arg11[%c0_16, %c0_17] : memref<1x128xf32, #tpu.memory_space<vmem>>, vector<1x128xf32>
      %24 = arith.mulf %13, %13 : vector<8x128xf32>
      %cst_18 = arith.constant dense<0.000000e+00> : vector<1x128xf32>
      %25 = tpu.matmul %18, %24, %cst_18 {dimension_numbers = #tpu.dot_dimension_numbers<[1], [0], [0], [1], [0, 0, 1, 1], [], []>} : vector<1x8xf32>, vector<8x128xf32>, vector<1x128xf32> -> vector<1x128xf32>
      %26 = arith.addf %23, %25 : vector<1x128xf32>
      %c0_19 = arith.constant 0 : index
      %c0_20 = arith.constant 0 : index
      %27 = vector.load %arg11[%c0_19, %c0_20] : memref<1x128xf32, #tpu.memory_space<vmem>>, vector<1x128xf32>
      tpu.vector_store %arg11[%c0_19, %c0_20], %26 {strides = array<i32>} : memref<1x128xf32, #tpu.memory_space<vmem>>, vector<1x128xf32>,
    } else {
    }
    %c1_i32 = arith.constant 1 : i32
    %8 = arith.cmpi eq, %arg0, %c1_i32 : i32
    %9 = arith.extui %8 : i1 to i32
    %c0_i32_4 = arith.constant 0 : i32
    %10 = arith.cmpi ne, %9, %c0_i32_4 : i32
    scf.if %10 {
      %c0_i32_5 = arith.constant 0 : i32
      %11 = arith.cmpi eq, %arg1, %c0_i32_5 : i32
      %12 = arith.extui %11 : i1 to i32
      %c0_i32_6 = arith.constant 0 : i32
      %13 = arith.cmpi ne, %12, %c0_i32_6 : i32
      scf.if %13 {
        %c0_19 = arith.constant 0 : index
        %c0_20 = arith.constant 0 : index
        %31 = vector.load %arg10[%c0_19, %c0_20] : memref<1x128xf32, #tpu.memory_space<vmem>>, vector<1x128xf32>
        %cst_21 = arith.constant 6.250000e-02 : f32
        %32 = vector.broadcast %cst_21 : f32 to vector<1x128xf32>
        %33 = arith.mulf %31, %32 : vector<1x128xf32>
        %c0_22 = arith.constant 0 : index
        %c0_23 = arith.constant 0 : index
        %34 = vector.load %arg11[%c0_22, %c0_23] : memref<1x128xf32, #tpu.memory_space<vmem>>, vector<1x128xf32>
        %cst_24 = arith.constant 6.250000e-02 : f32
        %35 = vector.broadcast %cst_24 : f32 to vector<1x128xf32>
        %36 = arith.mulf %34, %35 : vector<1x128xf32>
        %37 = arith.mulf %33, %33 : vector<1x128xf32>
        %38 = arith.subf %36, %37 : vector<1x128xf32>
        %c0_25 = arith.constant 0 : index
        %c0_26 = arith.constant 0 : index
        %39 = vector.load %arg4[%c0_25, %c0_26] : memref<1x128xf32, #tpu.memory_space<vmem>>, vector<1x128xf32>
        %cst_27 = arith.constant 9.99999974E-6 : f32
        %40 = vector.broadcast %cst_27 : f32 to vector<1x128xf32>
        %41 = arith.addf %38, %40 : vector<1x128xf32>
        %42 = math.rsqrt %41 : vector<1x128xf32>
        %43 = arith.mulf %39, %42 : vector<1x128xf32>
        %c0_28 = arith.constant 0 : index
        %c0_29 = arith.constant 0 : index
        %44 = vector.load %arg12[%c0_28, %c0_29] : memref<1x128xf32, #tpu.memory_space<vmem>>, vector<1x128xf32>
        tpu.vector_store %arg12[%c0_28, %c0_29], %43 {strides = array<i32>} : memref<1x128xf32, #tpu.memory_space<vmem>>, vector<1x128xf32>,
        %c0_30 = arith.constant 0 : index
        %c0_31 = arith.constant 0 : index
        %45 = vector.load %arg5[%c0_30, %c0_31] : memref<1x128xf32, #tpu.memory_space<vmem>>, vector<1x128xf32>
        %46 = arith.mulf %33, %43 : vector<1x128xf32>
        %47 = arith.subf %45, %46 : vector<1x128xf32>
        %c0_32 = arith.constant 0 : index
        %c0_33 = arith.constant 0 : index
        %48 = vector.load %arg13[%c0_32, %c0_33] : memref<1x128xf32, #tpu.memory_space<vmem>>, vector<1x128xf32>
        tpu.vector_store %arg13[%c0_32, %c0_33], %47 {strides = array<i32>} : memref<1x128xf32, #tpu.memory_space<vmem>>, vector<1x128xf32>,
      } else {
      }
      %14 = arith.index_cast %arg1 : i32 to index
      %c0 = arith.constant 0 : index
      %c0_7 = arith.constant 0 : index
      %15 = vector.load %arg9[%14, %c0, %c0_7] : memref<2x8x128xf32, #tpu.memory_space<vmem>>, vector<1x8x128xf32>
      %16 = vector.shape_cast %15 : vector<1x8x128xf32> to vector<8x128xf32>
      %c0_8 = arith.constant 0 : index
      %c0_9 = arith.constant 0 : index
      %17 = vector.load %arg12[%c0_8, %c0_9] : memref<1x128xf32, #tpu.memory_space<vmem>>, vector<1x128xf32>
      %18 = vector.broadcast %17 : vector<1x128xf32> to vector<8x128xf32>
      %19 = arith.mulf %16, %18 : vector<8x128xf32>
      %c0_10 = arith.constant 0 : index
      %c0_11 = arith.constant 0 : index
      %20 = vector.load %arg13[%c0_10, %c0_11] : memref<1x128xf32, #tpu.memory_space<vmem>>, vector<1x128xf32>
      %21 = vector.broadcast %20 : vector<1x128xf32> to vector<8x128xf32>
      %22 = arith.addf %19, %21 : vector<8x128xf32>
      %cst = arith.constant 0.000000e+00 : f32
      %23 = vector.broadcast %cst : f32 to vector<8x128xf32>
      %24 = arith.maximumf %22, %23 : vector<8x128xf32>
      %c0_12 = arith.constant 0 : index
      %c0_13 = arith.constant 0 : index
      %25 = vector.load %arg6[%c0_12, %c0_13] : memref<128x128xf32, #tpu.memory_space<vmem>>, vector<128x128xf32>
      %cst_14 = arith.constant dense<0.000000e+00> : vector<8x128xf32>
      %26 = tpu.matmul %24, %25, %cst_14 {dimension_numbers = #tpu.dot_dimension_numbers<[1], [0], [0], [1], [0, 0, 1, 1], [], []>} : vector<8x128xf32>, vector<128x128xf32>, vector<8x128xf32> -> vector<8x128xf32>
      %c0_15 = arith.constant 0 : index
      %c0_16 = arith.constant 0 : index
      %27 = vector.load %arg7[%c0_15, %c0_16] : memref<1x128xf32, #tpu.memory_space<vmem>>, vector<1x128xf32>
      %28 = vector.broadcast %27 : vector<1x128xf32> to vector<8x128xf32>
      %29 = arith.addf %26, %28 : vector<8x128xf32>
      %c0_17 = arith.constant 0 : index
      %c0_18 = arith.constant 0 : index
      %30 = vector.load %arg8[%c0_17, %c0_18] : memref<8x128xf32, #tpu.memory_space<vmem>>, vector<8x128xf32>
      tpu.vector_store %arg8[%c0_17, %c0_18], %29 {strides = array<i32>} : memref<8x128xf32, #tpu.memory_space<vmem>>, vector<8x128xf32>,
    } else {
    }
    return
  }
  func.func @transform_0(%arg0: i32, %arg1: i32) -> (i32, i32) {
    %c1_i32 = arith.constant 1 : i32
    %0 = arith.subi %c1_i32, %arg0 : i32
    %1 = arith.muli %0, %arg1 : i32
    %c0_i32 = arith.constant 0 : i32
    %c0_i32_0 = arith.constant 0 : i32
    return %1, %c0_i32 : i32, i32
  }
  func.func @transform_1(%arg0: i32, %arg1: i32) -> (i32, i32) {
    %c0_i32 = arith.constant 0 : i32
    %c0_i32_0 = arith.constant 0 : i32
    %c0_i32_1 = arith.constant 0 : i32
    return %c0_i32, %c0_i32_0 : i32, i32
  }
  func.func @transform_2(%arg0: i32, %arg1: i32) -> (i32, i32) {
    %c0_i32 = arith.constant 0 : i32
    %c0_i32_0 = arith.constant 0 : i32
    %c0_i32_1 = arith.constant 0 : i32
    return %c0_i32, %c0_i32_0 : i32, i32
  }
  func.func @transform_3(%arg0: i32, %arg1: i32) -> (i32, i32) {
    %c0_i32 = arith.constant 0 : i32
    %c0_i32_0 = arith.constant 0 : i32
    %c0_i32_1 = arith.constant 0 : i32
    return %c0_i32, %c0_i32_0 : i32, i32
  }
  func.func @transform_4(%arg0: i32, %arg1: i32) -> (i32, i32) {
    %c0_i32 = arith.constant 0 : i32
    %c0_i32_0 = arith.constant 0 : i32
    %c0_i32_1 = arith.constant 0 : i32
    return %c0_i32, %c0_i32_0 : i32, i32
  }
  func.func @transform_5(%arg0: i32, %arg1: i32) -> (i32, i32) {
    %c0_i32 = arith.constant 0 : i32
    %c0_i32_0 = arith.constant 0 : i32
    %c0_i32_1 = arith.constant 0 : i32
    return %c0_i32, %c0_i32_0 : i32, i32
  }
  func.func @transform_6(%arg0: i32, %arg1: i32) -> (i32, i32) {
    %0 = arith.muli %arg0, %arg1 : i32
    %c0_i32 = arith.constant 0 : i32
    %c0_i32_0 = arith.constant 0 : i32
    return %0, %c0_i32 : i32, i32
  }
}

</mosaic_0001>

<bundles_post_ra>
// kernel: tpu_custom_call.1
= control target key start
LH: loop header
LB: loop body
LE: loop exit
PB: predicated region body
PF: predicated region fallthrough
CT: control target
= control target key end

     0   :  { %s2031_s0 = inlined_call_operand.hbm [shape: f32[16,128], index: 0, kind: input, shape index: {}]   ;;  %s2032_s1 = inlined_call_operand.hbm [shape: f32[128,128], index: 1, kind: input, shape index: {}]   ;;  %s2033_s2 = inlined_call_operand.hbm [shape: f32[1,128], index: 2, kind: input, shape index: {}]   ;;  %s2034_s3 = inlined_call_operand.hbm [shape: f32[1,128], index: 3, kind: input, shape index: {}]   ;;  %s2035_s4 = inlined_call_operand.hbm [shape: f32[128,128], index: 4, kind: input, shape index: {}]   ;;  %s2036_s5 = inlined_call_operand.hbm [shape: f32[1,128], index: 5, kind: input, shape index: {}]   ;;  %s2037_s6 = inlined_call_operand.hbm [shape: f32[16,128], index: 6, kind: output, shape index: {}]  }
   0x1   :  { %2045 = sst [smem:[#allocation28_spill]] %s2031_s0 }
   0x2   :  { %2046 = sst [smem:[#allocation29_spill]] %s2032_s1 }
   0x3   :  { %2047 = sst [smem:[#allocation30_spill]] %s2033_s2 }
   0x4   :  { %2048 = sst [smem:[#allocation31_spill]] %s2037_s6 }
   0x5   :  { %11 = vsyncpa [#allocation8], 0 }
   0x6   :  { %13 = vsyncpa [#allocation8 + $0x1], 0 }
   0x7   :  { %14 = vsyncpa [#allocation11], 0 }
   0x8   :  { %15 = vsyncpa [#allocation14], 0 }
   0x9   :  { %16 = vsyncpa [#allocation17], 0 }
   0xa   :  { %17 = vsyncpa [#allocation9], 0 }
   0xb   :  { %19 = vsyncpa [#allocation9 + $0x1], 0  ;;  %s1615_s21 = smov 0   ;;  %s1617_s22 = smov 0  }
   0xc   :  { %s1619_s23 = smov 0   ;;  %s1621_s24 = smov 0  }
   0xd   :  { %s1623_s25 = smov 0   ;;  %s1625_s26 = smov 0  }
   0xe   :  { %s1627_s27 = smov 0   ;;  %s1629_s28 = smov 0  }
   0xf   :  { %s1631_s29 = smov 0   ;;  %s1633_s30 = smov 0  }
  0x10   :  { %s1635_s7 = smov 0  }
  0x11 LB: > { %2049 = sst [smem:[#allocation24_spill]] %s1521_s21  ;;  %s893_s8 = sadd.s32 4294967295, %s1561_s7   ;;  %s1561_s7 = sphi %s1635_s7, %s25_s7   ;;  %s1557_s30 = sphi %s1633_s30, %s2095_s30   ;;  %s1553_s29 = sphi %s1631_s29, %s2094_s29   ;;  %s1549_s28 = sphi %s1629_s28, %s2093_s28   ;;  %s1545_s27 = sphi %s1627_s27, %s2092_s27   ;;  %s1541_s26 = sphi %s1625_s26, %s2091_s26   ;;  %s1537_s25 = sphi %s1623_s25, %s2090_s25   ;;  %s1533_s24 = sphi %s1621_s24, %s2089_s24   ;;  %s1529_s23 = sphi %s1619_s23, %s2088_s23   ;;  %s1525_s22 = sphi %s1617_s22, %s2087_s22   ;;  %s1521_s21 = sphi %s1615_s21, %s2086_s21  }
  0x12   : > { %2050 = sst [smem:[#allocation25_spill]] %s1545_s27  ;;  %p895_p0 = scmp.ge.s32.totalorder %s1561_s7, 1 }
  0x13   : > { %2051 = sst [smem:[#allocation26_spill]] %s1549_s28  ;;  %p1672_p1 = scmp.eq.s32.totalorder %s893_s8, 0 }
  0x14   : > { %p1676_p2 = scmp.eq.s32.totalorder %s893_s8, 3  ;;  %p205_p3 = scmp.lt.s32.totalorder %s1561_s7, 5 }
  0x15   : > { %s2052_s9 = scalar_select %p1672_p1, 1, 0 }
  0x16   : > { %s2053_s10 = scalar_select %p1676_p2, 1, 0 }
  0x17   : > { %p1681_p4 = pnand %p895_p0, %p205_p3  ;;  %s1563_s12 = smov [#allocation10]  }
  0x18   : > { %s217_s13 = sshll.u32 %s1563_s12, 4  ;;  %s1564_s15 = smov [#allocation13]   ;;  %s1685_s13 = int_to_ptr.vmem [resolvable:$true] %s217_s13 }
  0x19   : > { %s2054_s11 = scalar_select %p1681_p4, 1, 0 }
  0x1a   : > { %p1116_p5 = pneg %p1681_p4  ;;  %s242_s16 = sshll.u32 %s1564_s15, 4  ;;  %s1695_s16 = int_to_ptr.vmem [resolvable:$true] %s242_s16 }
  0x1b   : > { %2055 = sst [smem:[#allocation27_spill]] %s2054_s11  ;;  %s1565_s17 = smov [#allocation12]  }
  0x1c   : > { %p1691_p6 = pnand %p1116_p5, %p1672_p1  ;;  %s231_s18 = sshll.u32 %s1565_s17, 4  ;;  %s1697_s18 = int_to_ptr.vmem [resolvable:$true] %s231_s18 }
  0x1d   : > { %s2057_s1 = sld [smem:[#allocation29_spill]] }
  0x1e   : > { %p1707_p8 = pneg %p1691_p6 }
  0x23   : > { %s1257_s8 = scalar_lea.hbm %s2057_s1, 2048 }
  0x24   : > { %p1258_p7 = scmp.ne.s32.totalorder %s2057_s1, %s1257_s8  ;;  %p1264_p11 = scmp.lt.u32.totalorder %s1257_s8, %s2057_s1 }
  0x26   : > { %p1260_p9 = pnand %p1707_p8, %p1258_p7 }
  0x28   : > { %p1261_p10 = pneg %p1260_p9 }
  0x2a   : > { %p1266_p12 = pnand %p1264_p11, %p1261_p10 }
  0x2c   : > { %1269 = shalt.err (!%p1266_p12)
}
  0x2d   : > { %s1270_s6 = scalar_lea.vmem %s1685_s13, 2048  ;;  %p1278_p5 = scmp.lt.s32.totalorder %s1685_s13, %s1685_s13 }
  0x2e   : > { %p1271_p13 = scmp.ne.s32.totalorder %s1685_s13, %s1270_s6  ;;  %p1279_p4 = scmp.lt.s32.totalorder %s1270_s6, %s1270_s6 }
  0x30   : > { %p1273_p0 = pnand %p1271_p13, %p1707_p8  ;;  %p1280_p7 = por %p1279_p4, %p1278_p5 }
  0x32   : > { %p1274_p3 = pneg %p1273_p0 }
  0x34   : > { %p1281_p9 = pnand %p1280_p7, %p1274_p3 }
  0x36   : > { %1284 = shalt.err (!%p1281_p9)
}
  0x37   : > { %s1566_s19 = smov 128   ;;  %s1567_s20 = smov 8  }
  0x38   : > { %1119 = dma.hbm_to_vmem [thread:$0]  (!%p1691_p6), %s2057_s1, 2048, %s1685_s13, [#allocation11], %s1566_s19, %s1566_s19, %s1567_s20  }
  0x39   : > { %s1285_s6 = scalar_lea.hbm %s2034_s3, 16 }
  0x3a   : > { %p1286_p4 = scmp.ne.s32.totalorder %s2034_s3, %s1285_s6  ;;  %p1292_p12 = scmp.lt.u32.totalorder %s1285_s6, %s2034_s3 }
  0x3c   : > { %p1288_p10 = pnand %p1286_p4, %p1707_p8 }
  0x3e   : > { %p1289_p11 = pneg %p1288_p10 }
  0x40   : > { %p1294_p13 = pnand %p1292_p12, %p1289_p11 }
  0x42   : > { %1297 = shalt.err (!%p1294_p13)
}
  0x43   : > { %s1298_s13 = scalar_lea.vmem %s1695_s16, 16  ;;  %s1305_s28 = scalar_lea.vmem %s1695_s16, 32 }
  0x44   : > { %p1299_p0 = scmp.ne.s32.totalorder %s1695_s16, %s1298_s13  ;;  %p1306_p7 = scmp.lt.s32.totalorder %s1695_s16, %s1695_s16 }
  0x45   : > { %p1307_p9 = scmp.lt.s32.totalorder %s1305_s28, %s1298_s13 }
  0x46   : > { %p1301_p3 = pnand %p1299_p0, %p1707_p8 }
  0x47   : > { %p1308_p4 = por %p1307_p9, %p1306_p7 }
  0x48   : > { %p1302_p5 = pneg %p1301_p3 }
  0x4a   : > { %p1309_p10 = pnand %p1308_p4, %p1302_p5 }
  0x4c   : > { %1312 = shalt.err (!%p1309_p10)
}
  0x4d   : > { %1125 = dma.hbm_to_vmem [thread:$0]  (!%p1691_p6), %s2034_s3, 16, %s1695_s16, [#allocation14]  }
  0x4e   : > { %s2059_s2 = sld [smem:[#allocation30_spill]] }
  0x54   : > { %s1313_s12 = scalar_lea.hbm %s2059_s2, 16 }
  0x55   : > { %p1314_p11 = scmp.ne.s32.totalorder %s2059_s2, %s1313_s12  ;;  %p1320_p0 = scmp.lt.u32.totalorder %s1313_s12, %s2059_s2 }
  0x57   : > { %p1316_p12 = pnand %p1314_p11, %p1707_p8 }
  0x59   : > { %p1317_p13 = pneg %p1316_p12 }
  0x5b   : > { %p1322_p3 = pnand %p1320_p0, %p1317_p13 }
  0x5d   : > { %1325 = shalt.err (!%p1322_p3)
}
  0x5e   : > { %s1326_s16 = scalar_lea.vmem %s1697_s18, 16  ;;  %s1333_s28 = scalar_lea.vmem %s1697_s18, 32 }
  0x5f   : > { %p1327_p5 = scmp.ne.s32.totalorder %s1697_s18, %s1326_s16  ;;  %p1334_p4 = scmp.lt.s32.totalorder %s1697_s18, %s1697_s18 }
  0x60   : > { %p1335_p10 = scmp.lt.s32.totalorder %s1333_s28, %s1326_s16 }
  0x61   : > { %p1329_p7 = pnand %p1327_p5, %p1707_p8 }
  0x62   : > { %p1336_p11 = por %p1335_p10, %p1334_p4 }
  0x63   : > { %p1330_p9 = pneg %p1329_p7 }
  0x65   : > { %p1337_p12 = pnand %p1336_p11, %p1330_p9 }
  0x67   : > { %1340 = shalt.err (!%p1337_p12)
}
  0x68   : > { %1122 = dma.hbm_to_vmem [thread:$0]  (!%p1691_p6), %s2059_s2, 16, %s1697_s18, [#allocation11]  }
  0x69   : > { %s1568_s11 = smov [#allocation15]   ;;  %s1569_s12 = smov [#allocation16]  }
  0x6a   : > { %s252_s8 = sshll.u32 %s1568_s11, 4  ;;  %s266_s15 = sshll.u32 %s1569_s12, 4  ;;  %s253_s8 = int_to_ptr.vmem [resolvable:$true] %s252_s8  ;;  %s1779_s15 = int_to_ptr.vmem [resolvable:$true] %s266_s15 }
  0x6b   : > { %s1341_s13 = scalar_lea.hbm %s2035_s4, 2048 }
  0x6c   : > { %p1342_p13 = scmp.ne.s32.totalorder %s2035_s4, %s1341_s13  ;;  %p1348_p5 = scmp.lt.u32.totalorder %s1341_s13, %s2035_s4 }
  0x6e   : > { %p1344_p0 = pnand %p1342_p13, %p1707_p8 }
  0x70   : > { %p1345_p3 = pneg %p1344_p0 }
  0x72   : > { %p1350_p7 = pnand %p1348_p5, %p1345_p3 }
  0x74   : > { %1353 = shalt.err (!%p1350_p7)
}
  0x75   : > { %s1354_s21 = scalar_lea.vmem %s253_s8, 2048  ;;  %p1362_p11 = scmp.lt.s32.totalorder %s253_s8, %s253_s8 }
  0x76   : > { %p1355_p9 = scmp.ne.s32.totalorder %s253_s8, %s1354_s21  ;;  %p1363_p12 = scmp.lt.s32.totalorder %s1354_s21, %s1354_s21 }
  0x78   : > { %p1357_p4 = pnand %p1355_p9, %p1707_p8  ;;  %p1364_p2 = por %p1363_p12, %p1362_p11 }
  0x7a   : > { %p1358_p10 = pneg %p1357_p4 }
  0x7c   : > { %p1365_p1 = pnand %p1364_p2, %p1358_p10 }
  0x7e   : > { %1368 = shalt.err (!%p1365_p1)
}
  0x7f   : > { %1128 = dma.hbm_to_vmem [thread:$0]  (!%p1691_p6), %s2035_s4, 2048, %s253_s8, [#allocation14], %s1566_s19, %s1566_s19, %s1567_s20  }
  0x80   : > { %s1369_s13 = scalar_lea.hbm %s2036_s5, 16 }
  0x81   : > { %p1370_p13 = scmp.ne.s32.totalorder %s2036_s5, %s1369_s13  ;;  %p1376_p0 = scmp.lt.u32.totalorder %s1369_s13, %s2036_s5 }
  0x83   : > { %p1372_p1 = pnand %p1370_p13, %p1707_p8 }
  0x85   : > { %p1373_p2 = pneg %p1372_p1 }
  0x87   : > { %p1378_p3 = pnand %p1376_p0, %p1373_p2 }
  0x89   : > { %1381 = shalt.err (!%p1378_p3)
}
  0x8a   : > { %s1382_s19 = scalar_lea.vmem %s1779_s15, 16  ;;  %s1389_s20 = scalar_lea.vmem %s1779_s15, 32 }
  0x8b   : > { %p1383_p5 = scmp.ne.s32.totalorder %s1779_s15, %s1382_s19  ;;  %p1390_p4 = scmp.lt.s32.totalorder %s1779_s15, %s1779_s15 }
  0x8c   : > { %p1391_p10 = scmp.lt.s32.totalorder %s1389_s20, %s1382_s19 }
  0x8d   : > { %p1385_p7 = pnand %p1383_p5, %p1707_p8 }
  0x8e   : > { %p1392_p11 = por %p1391_p10, %p1390_p4 }
  0x8f   : > { %p1386_p9 = pneg %p1385_p7 }
  0x91   : > { %p1393_p12 = pnand %p1392_p11, %p1386_p9 }
  0x93   : > { %1396 = shalt.err (!%p1393_p12)
}
  0x94   : > { %1131 = dma.hbm_to_vmem [thread:$0]  (!%p1691_p6), %s2036_s5, 16, %s1779_s15, [#allocation17]  }
  0x95   : > { %s34_s14 = sadd.s32 1, %s1553_s29  ;;  %s37_s11 = sadd.s32 1, %s1557_s30 }
  0x96   : > { %p35_p8 = scmp.ge.s32.totalorder %s34_s14, 2  ;;  %s41_s12 = ssub.s32 1, %s1557_s30 }
  0x97   : > { %s48_s17 = sadd.s32 1, %s1541_s26  ;;  %s1835_s6 = smul.u32 %s1553_s29, %s41_s12 }
  0x98   : > { %s2097_s14 = smov (%p35_p8, %s34_s14), 0  ;;  %s2099_s11 = smov (!%p35_p8, %s37_s11), %s1557_s30 }
  0x99   : > { %p55_p13 = scmp.ne.s32.totalorder %s1541_s26, %s1537_s25  ;;  %p39_p6 = scmp.ge.s32.totalorder %s2099_s11, 2 }
  0x9a   : > { %p56_p1 = scmp.eq.s32.totalorder %s1561_s7, 0  ;;  %p61_p2 = scmp.ne.s32.totalorder %s1537_s25, %s1533_s24 }
  0x9b   : > { %s176_s15 = smul.u32 %s1553_s29, %s1557_s30  ;;  %s2060_s13 = sld [smem:[#allocation24_spill]] }
  0x9c   : > { %s2101_s11 = smov (%p39_p6, %s2099_s11), 0  ;;  %p1846_p0 = por %p56_p1, %p55_p13 }
  0x9d   : > { %p2062_p3 = scmp.ne.s32.totalorder %s2052_s9, 0  ;;  %s43_s24 = ssub.s32 1, %s2101_s11 }
  0x9e   : > { %s177_s0 = smul.u32 %s2101_s11, %s2097_s14  ;;  %s181_s19 = sadd.s32 1, %s1529_s23 }
  0x9f   : > { %p1852_p5 = por %p2062_p3, %p61_p2  ;;  %s44_s18 = smul.u32 %s43_s24, %s2097_s14 }
  0xa0   : > { %s178_s20 = ssub.s32 %s176_s15, %s177_s0  ;;  %p191_p7 = scmp.ne.s32.totalorder %s1529_s23, %s1525_s22 }
  0xa1   : > { %s45_s8 = ssub.s32 %s1835_s6, %s44_s18  ;;  %p179_p9 = scmp.eq.s32.totalorder %s178_s20, 0 }
  0xa2   : > { %p46_p4 = scmp.eq.s32.totalorder %s45_s8, 0  ;;  %p2064_p10 = scmp.ne.s32.totalorder %s2053_s10, 0 }
  0xa3   : > { %s1871_s12 = scalar_select %p179_p9, %s1529_s23, %s181_s19  }
  0xa4   : > { %p1866_p11 = por %p2064_p10, %p191_p7  ;;  %p197_p12 = scmp.ne.s32.totalorder %s1525_s22, %s2060_s13 }
  0xa5   : > { %s1874_s27 = scalar_select %p46_p4, %s1541_s26, %s48_s17  }
  0xa6   : > { %s2065_s21 = scalar_select %p1866_p11, 1, 0 }
  0xa7   : > { %s2066_s1 = sadd.s32 4294967294, %s1561_s7   ;;  %p1145_p13 = scmp.lt.s32.totalorder %s1561_s7, 4 }
  0xa8   : > { %p198_p8 = scmp.eq.s32.totalorder %s2066_s1, 3  ;;  %s277_s24 = sand.u32 1, %s1541_s26  }
  0xa9   : > { %s902_s0 = sshll.u32 %s277_s24, 3  ;;  %s903_s18 = sshll.u32 %s1835_s6, 7 }
  0xaa   : > { %p1882_p6 = por %p198_p8, %p197_p12  ;;  %s2068_s8 = sld [smem:[#allocation28_spill]] }
  0xab   : > { %s281_s17 = scalar_lea.vmem [#allocation7], %s902_s0  ;;  %p1894_p1 = pnand %p1145_p13, %p1846_p0 }
  0xac   : > { %s2067_s15 = scalar_select %p1882_p6, 1, 0 }
  0xad   : > { %s290_s13 = sshll.u32 %s281_s17, 4  ;;  %s278_s6 = scalar_lea.sflag [#allocation8], %s277_s24  ;;  %s1898_s13 = int_to_ptr.vmem [resolvable:$true] %s290_s13 }
  0xae   : > { %p1399_p3 = pneg %p1894_p1 }
  0xb0   : > { %s1890_s2 = scalar_lea.hbm %s2068_s8, %s903_s18  ;;  %s1402_s16 = scalar_lea.hbm %s2068_s8, 256 }
  0xb1   : > { %s1397_s19 = scalar_lea.hbm %s1890_s2, 128  ;;  %p1403_p0 = scmp.lt.u32.totalorder %s1890_s2, %s2068_s8 }
  0xb2   : > { %p1398_p2 = scmp.ne.s32.totalorder %s1890_s2, %s1397_s19  ;;  %p1404_p4 = scmp.lt.u32.totalorder %s1402_s16, %s1397_s19 }
  0xb3   : > { %p1406_p12 = scmp.lt.u32.totalorder %s1397_s19, %s1890_s2 }
  0xb4   : > { %p1400_p7 = pnand %p1399_p3, %p1398_p2  ;;  %p1405_p10 = por %p1404_p4, %p1403_p0 }
  0xb6   : > { %p1401_p9 = pneg %p1400_p7  ;;  %p1407_p8 = por %p1406_p12, %p1405_p10 }
  0xb8   : > { %p1408_p13 = pnand %p1407_p8, %p1401_p9 }
  0xba   : > { %1411 = shalt.err (!%p1408_p13)
}
  0xbb   : > { %s1412_s24 = scalar_lea.vmem %s1898_s13, 128  ;;  %s1570_s17 = smov [#allocation7]  }
  0xbc   : > { %p1413_p2 = scmp.ne.s32.totalorder %s1898_s13, %s1412_s24  ;;  %s1417_s0 = sshll.u32 %s1570_s17, 4  ;;  %s1418_s0 = int_to_ptr.vmem [resolvable:$false] %s1417_s0 }
  0xbd   : > { %s1419_s18 = scalar_lea.vmem %s1418_s0, 256  ;;  %p1420_p11 = scmp.lt.s32.totalorder %s1898_s13, %s1418_s0 }
  0xbe   : > { %p1415_p7 = pnand %p1413_p2, %p1399_p3  ;;  %p1421_p0 = scmp.lt.s32.totalorder %s1419_s18, %s1412_s24 }
  0xc0   : > { %p1416_p6 = pneg %p1415_p7  ;;  %p1422_p4 = por %p1421_p0, %p1420_p11 }
  0xc2   : > { %p1423_p10 = pnand %p1422_p4, %p1416_p6 }
  0xc4   : > { %1426 = shalt.err (!%p1423_p10)
}
  0xc5   : > { %1135 = dma.hbm_to_vmem [thread:$0]  (!%p1894_p1), %s1890_s2, 128, %s1898_s13, %s278_s6  }
  0xc6   : > { %s2070_s19 = sld [smem:[#allocation27_spill]] }
  0xcc   : > { %p2071_p9 = scmp.ne.s32.totalorder %s2070_s19, 0 }
  0xcd   : > { %s301_s16 = sand.u32 (!%p2071_p9), 1, %s1537_s25  }
  0xce   : > { %299 = sbr.rel (%p2071_p9) target bundleno = 1031 (0x407), region = 44  ;;  %s1928_s10 = sshll.u32 (!%p2071_p9), %s301_s16, 3 }
  0xcf   : > { %s302_s20 = scalar_lea.sflag (!%p2071_p9), [#allocation8], %s301_s16  ;;  %s305_s17 = scalar_lea.vmem (!%p2071_p9), [#allocation7], %s1928_s10 }
  0xd5   : > { %1500 = dma.done.wait (%p1852_p5), %s302_s20, 128  }
  0xd6   : > { %1502 = vsyncadd (%p1852_p5), %s302_s20, 4294967168  ;;  %p2072_p11 = scmp.ne.s32.totalorder %s2052_s9, 0 }
  0xd8   : > { %1504 = dma.done.wait (%p2072_p11), [#allocation11], 2064  }
  0xd9   : > { %1506 = vsyncadd (%p2072_p11), [#allocation11], 4294965232 }
  0xda   : > { %1508 = dma.done.wait (%p2072_p11), [#allocation14], 2064  }
  0xdb   : > { %1510 = vsyncadd (%p2072_p11), [#allocation14], 4294965232 }
  0xdc   : > { %1512 = dma.done.wait (%p2072_p11), [#allocation17], 16  }
  0xdd   : > { %1514 = vsyncadd (%p2072_p11), [#allocation17], 4294967280  ;;  %s2073_s2 = sld [smem:[#allocation26_spill]]  ;;  %s2074_s28 = sld [smem:[#allocation25_spill]] }
  0xde   : > { %s351_s13 = sand.u32 1, %s1525_s22  }
  0xdf   : > { %s1951_s1 = sshll.u32 %s351_s13, 3 }
  0xe0   : > { %s353_s6 = scalar_lea.vmem [#allocation18], %s1951_s1 }
  0xe3   : > { %p357_p5 = scmp.eq.s32.totalorder %s2073_s2, 0  ;;  %p358_p6 = scmp.eq.s32.totalorder %s2074_s28, 0 }
  0xe5   : > { %p359_p1 = pnand %p358_p6, %p357_p5 }
  0xe6   : > { %v1571_v0 = vmov (!%p359_p1), 0.0  }
  0xe7   : > { %362 = sbr.rel (%p359_p1) target bundleno = 238 (0xee), region = 72  ;;  %363 = vst [vmem:[#allocation3] sm:$0x1] (!%p359_p1), %v1571_v0  ;;  %364 = vst [vmem:[#allocation4] sm:$0x1] (!%p359_p1), %v1571_v0 }
  0xee PF: > { %s2075_s9 = sld [smem:[#allocation26_spill]] }
  0xf4   : > { %p912_p3 = scmp.ne.s32.totalorder %s2075_s9, 0 }
  0xf5   : > { %v369_v1 = vld [vmem:[#allocation10] sm:$0xff] (!%p912_p3)  ;;  %v370_v2 = vld [vmem:[#allocation10 + $0x8] sm:$0xff] (!%p912_p3)  ;;  %v371_v3 = vld [vmem:[#allocation10 + $0x10] sm:$0xff] (!%p912_p3)  ;;  %v1572_v4 = vmov (!%p912_p3), 0.0|0.0   ;;  %vm1573_vm0 = vmmov (!%p912_p3), 0   ;;  %v1574_v7 = vmov (!%p912_p3), 0.0  }
  0xf6   : > { %367 = sbr.rel (%p912_p3) target bundleno = 711 (0x2c7), region = 76  ;;  %1044 = vmatprep.subr.bf16.mxu0 (!%p912_p3), %v1572_v4  ;;  %v1045_v5 = vpack.c.bf16 (!%p912_p3), %v370_v2, %v369_v1  ;;  %v372_v6 = vld [vmem:[#allocation10 + $0x18] sm:$0xff] (!%p912_p3)  ;;  %996 = vmatprep.mubr.msk.f32.mxu0 (!%p912_p3), %vm1573_vm0, %v1574_v7  ;;  %v373_v9 = vld [vmem:[#allocation10 + $0x20] sm:$0xff] (!%p912_p3)  ;;  %v374_v10 = vld [vmem:[#allocation10 + $0x28] sm:$0xff] (!%p912_p3)  ;;  %s2076_s24 = sld [smem:[#allocation25_spill]] (!%p912_p3)  ;;  %vm459_vm1 = vcmask (!%p912_p3), 64512  }
  0xf7   : > { %999 = vmatprep.subr.mxu1 (!%p912_p3), %v1574_v7  ;;  %1001 = vmatprep.mubr.msk.f32.mxu1 (!%p912_p3), %vm1573_vm0, %v1574_v7  ;;  %v1048_v8 = vpack.c.bf16 (!%p912_p3), %v372_v6, %v371_v3  ;;  %v1051_v11 = vpack.c.bf16 (!%p912_p3), %v374_v10, %v373_v9  ;;  %v375_v12 = vld [vmem:[#allocation10 + $0x30] sm:$0xff] (!%p912_p3)  ;;  %v376_v13 = vld [vmem:[#allocation10 + $0x38] sm:$0xff] (!%p912_p3)  ;;  %v377_v15 = vld [vmem:[#allocation10 + $0x40] sm:$0xff] (!%p912_p3)  ;;  %v1575_v31 = vmov (!%p912_p3), 1.0  }
  0xf8   : > { %1046 = vmatpush3.bf16.msra.mxu0 (!%p912_p3), %v1045_v5  ;;  %v1054_v14 = vpack.c.bf16 (!%p912_p3), %v376_v13, %v375_v12  ;;  %v378_v16 = vld [vmem:[#allocation10 + $0x48] sm:$0xff] (!%p912_p3)  ;;  %v379_v18 = vld [vmem:[#allocation10 + $0x50] sm:$0xff] (!%p912_p3)  ;;  %v380_v19 = vld [vmem:[#allocation10 + $0x58] sm:$0xff] (!%p912_p3) }
  0xf9   : > { %1047 = vmatprep.subr.bf16.mxu0 (!%p912_p3), %v1572_v4  ;;  %v1057_v17 = vpack.c.bf16 (!%p912_p3), %v378_v16, %v377_v15  ;;  %v1060_v20 = vpack.c.bf16 (!%p912_p3), %v380_v19, %v379_v18  ;;  %v381_v21 = vld [vmem:[#allocation10 + $0x60] sm:$0xff] (!%p912_p3)  ;;  %v382_v22 = vld [vmem:[#allocation10 + $0x68] sm:$0xff] (!%p912_p3)  ;;  %v383_v24 = vld [vmem:[#allocation10 + $0x70] sm:$0xff] (!%p912_p3) }
  0xfa   : > { %v1063_v23 = vpack.c.bf16 (!%p912_p3), %v382_v22, %v381_v21  ;;  %v384_v25 = vld [vmem:[#allocation10 + $0x78] sm:$0xff] (!%p912_p3)  ;;  %v458_v32 = vld [vmem:[#allocation3] sm:$0x1] (!%p912_p3)  ;;  %v535_v36 = vld [vmem:[#allocation4] sm:$0x1] (!%p912_p3) }
  0xfb   : > { %v1066_v26 = vpack.c.bf16 (!%p912_p3), %v384_v25, %v383_v24  ;;  %v368_v27 = vld [vmem:[%s305_s17] sm:$0xff] (!%p912_p3) }
  0xfc   : > { %1049 = vmatpush3.bf16.msra.mxu0 (!%p912_p3), %v1048_v8  ;;  %s913_s0 = sshll.u32 (!%p912_p3), %s2076_s24, 3 }
  0xfd   : > { %1050 = vmatprep.subr.bf16.mxu0 %v1572_v4  ;;  %s456_s18 = scalar_lea.vmem [#allocation2], %s913_s0 }
 0x100   : > { %1052 = vmatpush3.bf16.msra.mxu0 %v1051_v11 }
 0x101   : > { %1053 = vmatprep.subr.bf16.mxu0 %v1572_v4 }
 0x104   : > { %1055 = vmatpush3.bf16.msra.mxu0 %v1054_v14 }
 0x105   : > { %1056 = vmatprep.subr.bf16.mxu0 %v1572_v4 }
 0x108   : > { %1058 = vmatpush3.bf16.msra.mxu0 %v1057_v17 }
 0x109   : > { %1059 = vmatprep.subr.bf16.mxu0 %v1572_v4 }
 0x10c   : > { %1061 = vmatpush3.bf16.msra.mxu0 %v1060_v20 }
 0x10d   : > { %1062 = vmatprep.subr.bf16.mxu0 %v1572_v4 }
 0x110   : > { %1064 = vmatpush3.bf16.msra.mxu0 %v1063_v23 }
 0x111   : > { %1065 = vmatprep.subr.bf16.mxu0 %v1572_v4 }
 0x114   : > { %1067 = vmatpush3.bf16.msra.mxu0 %v1066_v26 }
 0x117   : > { %997 = vmatmul.mubr.f32.vlgmr.msra.gmra.mrb[0].mxu0 %v368_v27 }
 0x1ea   : > { %v451_v28 = vpop.f32.mrb[0].mxu0 }
 0x1eb   : > { %457 = vst [vmem:[%s456_s18] sm:$0xff] %v451_v28  ;;  %v536_v29 = vmul.f32 %v451_v28, %v451_v28  ;;  %v998_v30 = vpop.f32.mrb[1].mxu0  ;;  %1000 = vmatpush3.msra.mxu1 %v451_v28 }
 0x1ec   : > { %1002 = vmatmul.mubr.msk.f32.vlgmr.msra.gmra.mrb[0].mxu1 %vm459_vm1, %v1575_v31  ;;  %1004 = vmatprep.subr.mxu1 %v1574_v7 }
 0x1ed   : > { %1005 = vmatpush3.msra.mxu1 %v536_v29  ;;  %1006 = vmatprep.mubr.msk.f32.mxu1 %vm1573_vm0, %v1574_v7 }
 0x1f0   : > { %1007 = vmatmul.mubr.msk.f32.vlgmr.msra.gmra.mrb[2].mxu1 %vm459_vm1, %v1575_v31 }
 0x2bf   : > { %v529_v33 = vpop.f32.mrb[0].mxu1 }
 0x2c0   : > { %v533_v34 = vadd.f32 %v529_v33, %v458_v32  ;;  %v1003_v35 = vpop.f32.mrb[1].mxu1 }
 0x2c2   : > { %534 = vst [vmem:[#allocation3] sm:$0x1] %v533_v34 }
 0x2c3   : > { %v603_v37 = vpop.f32.mrb[2].mxu1 }
 0x2c4   : > { %v607_v38 = vadd.f32 %v603_v37, %v535_v36  ;;  %v1008_v39 = vpop.f32.mrb[3].mxu1 }
 0x2c6   : > { %608 = vst [vmem:[#allocation4] sm:$0x1] %v607_v38 }
 0x2c7 PF: > { %s2077_s19 = sld [smem:[#allocation26_spill]] }
 0x2cd   : > { %p916_p12 = scmp.ne.s32.totalorder %s2077_s19, 1 }
 0x2ce   : > { %s2078_s16 = sld [smem:[#allocation25_spill]] (!%p916_p12) }
 0x2cf   : > { %612 = sbr.rel (%p916_p12) target bundleno = 1002 (0x3ea), region = 80 }
 0x2d4   : > { %p917_p8 = scmp.ne.s32.totalorder (!%p916_p12), %s2078_s16, 0 }
 0x2d6   : > { %615 = sbr.rel (%p917_p8) target bundleno = 753 (0x2f1), region = 84  ;;  %v616_v40 = vld [vmem:[#allocation3] sm:$0x1] (!%p917_p8)  ;;  %v618_v41 = vld [vmem:[#allocation4] sm:$0x1] (!%p917_p8) }
 0x2d7   : > { %v617_v42 = vmul.f32 (!%p917_p8), 0.0625, %v616_v40  ;;  %v619_v43 = vmul.f32 (!%p917_p8), 0.0625, %v618_v41  ;;  %v622_v47 = vld [vmem:[#allocation12] sm:$0x1] (!%p917_p8)  ;;  %v627_v50 = vld [vmem:[#allocation13] sm:$0x1] (!%p917_p8) }
 0x2d9   : > { %v620_v44 = vmul.f32 (!%p917_p8), %v617_v42, %v617_v42 }
 0x2db   : > { %v621_v45 = vsub.f32 (!%p917_p8), %v619_v43, %v620_v44 }
 0x2dd   : > { %v623_v46 = vadd.f32 1e-05, %v621_v45 }
 0x2df   : > { %1255 = vrsqrt.f32 %v623_v46 }
 0x2e9   : > { %v1256_v48 = vpop.eup %1255 }
 0x2ea   : > { %v625_v49 = vmul.f32 %v1256_v48, %v622_v47 }
 0x2ec   : > { %626 = vst [vmem:[#allocation5] sm:$0x1] %v625_v49  ;;  %v628_v51 = vmul.f32 %v625_v49, %v617_v42 }
 0x2ee   : > { %v629_v52 = vsub.f32 %v627_v50, %v628_v51 }
 0x2f0   : > { %630 = vst [vmem:[#allocation6] sm:$0x1] %v629_v52 }
 0x2f1 PF: > { %v651_v53 = vld [vmem:[#allocation15] sm:$0xff]  ;;  %v652_v54 = vld [vmem:[#allocation15 + $0x8] sm:$0xff]  ;;  %v653_v55 = vld [vmem:[#allocation15 + $0x10] sm:$0xff]  ;;  %v1576_v56 = vmov 0.0|0.0   ;;  %vm1577_vm2 = vmmov 0   ;;  %v1578_v59 = vmov 0.0  }
 0x2f2   : > { %1068 = vmatprep.subr.bf16.mxu0 %v1576_v56  ;;  %v1069_v57 = vpack.c.bf16 %v652_v54, %v651_v53  ;;  %v654_v58 = vld [vmem:[#allocation15 + $0x18] sm:$0xff]  ;;  %1041 = vmatprep.mubr.msk.f32.mxu0 %vm1577_vm2, %v1578_v59  ;;  %s2079_s10 = sld [smem:[#allocation25_spill]]  ;;  %v655_v61 = vld [vmem:[#allocation15 + $0x20] sm:$0xff]  ;;  %v656_v62 = vld [vmem:[#allocation15 + $0x28] sm:$0xff] }
 0x2f3   : > { %v1072_v60 = vpack.c.bf16 %v654_v58, %v653_v55  ;;  %v1075_v63 = vpack.c.bf16 %v656_v62, %v655_v61  ;;  %v657_v0 = vld [vmem:[#allocation15 + $0x30] sm:$0xff]  ;;  %v658_v1 = vld [vmem:[#allocation15 + $0x38] sm:$0xff]  ;;  %v659_v3 = vld [vmem:[#allocation15 + $0x40] sm:$0xff] }
 0x2f4   : > { %1070 = vmatpush3.bf16.msra.mxu0 %v1069_v57  ;;  %v1078_v2 = vpack.c.bf16 %v658_v1, %v657_v0  ;;  %v660_v4 = vld [vmem:[#allocation15 + $0x48] sm:$0xff]  ;;  %v661_v6 = vld [vmem:[#allocation15 + $0x50] sm:$0xff]  ;;  %v662_v7 = vld [vmem:[#allocation15 + $0x58] sm:$0xff] }
 0x2f5   : > { %1071 = vmatprep.subr.bf16.mxu0 %v1576_v56  ;;  %v1081_v5 = vpack.c.bf16 %v660_v4, %v659_v3  ;;  %v1084_v8 = vpack.c.bf16 %v662_v7, %v661_v6  ;;  %v919_v10 = vld [vmem:[#allocation5] ss:$0 sm:$0xff]  ;;  %v663_v11 = vld [vmem:[#allocation15 + $0x60] sm:$0xff]  ;;  %v665_v16 = vld [vmem:[#allocation15 + $0x70] sm:$0xff] }
 0x2f6   : > { %v664_v12 = vld [vmem:[#allocation15 + $0x68] sm:$0xff]  ;;  %v666_v17 = vld [vmem:[#allocation15 + $0x78] sm:$0xff]  ;;  %v921_v21 = vld [vmem:[#allocation16] ss:$0 sm:$0xff] }
 0x2f7   : > { %v1087_v14 = vpack.c.bf16 %v664_v12, %v663_v11  ;;  %v920_v15 = vld [vmem:[#allocation6] ss:$0 sm:$0xff]  ;;  %v1090_v19 = vpack.c.bf16 %v666_v17, %v665_v16 }
 0x2f8   : > { %1073 = vmatpush3.bf16.msra.mxu0 %v1072_v60  ;;  %s918_s20 = sshll.u32 %s2079_s10, 3 }
 0x2f9   : > { %1074 = vmatprep.subr.bf16.mxu0 %v1576_v56  ;;  %s632_s17 = scalar_lea.vmem [#allocation2], %s918_s20 }
 0x2fa   : > { %v633_v9 = vld [vmem:[%s632_s17] sm:$0xff] }
 0x2fb   : > { %v641_v13 = vmul.f32 %v919_v10, %v633_v9 }
 0x2fc   : > { %1076 = vmatpush3.bf16.msra.mxu0 %v1075_v63 }
 0x2fd   : > { %1077 = vmatprep.subr.bf16.mxu0 %v1576_v56  ;;  %v649_v18 = vadd.f32 %v920_v15, %v641_v13 }
 0x2ff   : > { %v650_v20 = vmax.f32 %v649_v18, 0.0 }
 0x300   : > { %1079 = vmatpush3.bf16.msra.mxu0 %v1078_v2 }
 0x301   : > { %1080 = vmatprep.subr.bf16.mxu0 %v1576_v56 }
 0x304   : > { %1082 = vmatpush3.bf16.msra.mxu0 %v1081_v5 }
 0x305   : > { %1083 = vmatprep.subr.bf16.mxu0 %v1576_v56 }
 0x308   : > { %1085 = vmatpush3.bf16.msra.mxu0 %v1084_v8 }
 0x309   : > { %1086 = vmatprep.subr.bf16.mxu0 %v1576_v56 }
 0x30c   : > { %1088 = vmatpush3.bf16.msra.mxu0 %v1087_v14 }
 0x30d   : > { %1089 = vmatprep.subr.bf16.mxu0 %v1576_v56 }
 0x310   : > { %1091 = vmatpush3.bf16.msra.mxu0 %v1090_v19 }
 0x313   : > { %1042 = vmatmul.mubr.f32.vlgmr.msra.gmra.mrb[0].mxu0 %v650_v20 }
 0x3e6   : > { %v740_v22 = vpop.f32.mrb[0].mxu0 }
 0x3e7   : > { %v741_v23 = vadd.f32 %v921_v21, %v740_v22  ;;  %v1043_v24 = vpop.f32.mrb[1].mxu0 }
 0x3e9   : > { %744 = vst [vmem:[%s353_s6] sm:$0xff] %v741_v23 }
 0x3ea PF: > { %s2080_s2 = sld [smem:[#allocation26_spill]]  ;;  %s2081_s28 = sld [smem:[#allocation25_spill]] }
 0x3eb   : > { %s760_s24 = sshll.u32 %s353_s6, 4  ;;  %s2082_s16 = sld [smem:[#allocation31_spill]]  ;;  %s1971_s24 = int_to_ptr.vmem [resolvable:$true] %s760_s24 }
 0x3ec   : > { %s746_s20 = scalar_lea.sflag [#allocation9], %s351_s13  ;;  %s1427_s17 = scalar_lea.vmem %s1971_s24, 128 }
 0x3ed   : > { %p1428_p13 = scmp.ne.s32.totalorder %s1971_s24, %s1427_s17  ;;  %p2083_p2 = scmp.ne.s32.totalorder %s2065_s21, 0 }
 0x3ef   : > { %p1429_p7 = pnand %p1428_p13, %p2083_p2 }
 0x3f0   : > { %s753_s9 = smul.u32 %s2081_s28, %s2080_s2  ;;  %s1579_s2 = smov [#allocation18]  }
 0x3f1   : > { %p1430_p0 = pneg %p1429_p7  ;;  %s1431_s1 = sshll.u32 %s1579_s2, 4  ;;  %s1432_s1 = int_to_ptr.vmem [resolvable:$false] %s1431_s1 }
 0x3f2   : > { %s923_s0 = sshll.u32 %s753_s9, 7  ;;  %s1433_s6 = scalar_lea.vmem %s1432_s1, 256 }
 0x3f3   : > { %s758_s10 = scalar_lea.hbm %s2082_s16, %s923_s0  ;;  %p1434_p4 = scmp.lt.s32.totalorder %s1971_s24, %s1432_s1 }
 0x3f4   : > { %p1435_p10 = scmp.lt.s32.totalorder %s1433_s6, %s1427_s17 }
 0x3f6   : > { %p1436_p9 = por %p1435_p10, %p1434_p4 }
 0x3f8   : > { %p1437_p11 = pnand %p1436_p9, %p1430_p0 }
 0x3fa   : > { %1440 = shalt.err (!%p1437_p11)
}
 0x3fb   : > { %s1441_s28 = scalar_lea.hbm %s758_s10, 128  ;;  %s1445_s0 = scalar_lea.hbm %s2082_s16, 256 }
 0x3fc   : > { %p1442_p5 = scmp.ne.s32.totalorder %s758_s10, %s1441_s28  ;;  %p1446_p3 = scmp.lt.u32.totalorder %s758_s10, %s2082_s16 }
 0x3fd   : > { %p1447_p12 = scmp.lt.u32.totalorder %s1445_s0, %s1441_s28  ;;  %p1449_p13 = scmp.lt.u32.totalorder %s1441_s28, %s758_s10 }
 0x3fe   : > { %p1443_p6 = pnand %p1442_p5, %p2083_p2 }
 0x3ff   : > { %p1448_p8 = por %p1447_p12, %p1446_p3 }
 0x400   : > { %p1444_p1 = pneg %p1443_p6 }
 0x401   : > { %p1450_p7 = por %p1449_p13, %p1448_p8 }
 0x403   : > { %p1451_p0 = pnand %p1450_p7, %p1444_p1 }
 0x405   : > { %1454 = shalt.err (!%p1451_p0)
}
 0x406   : > { %1114 = dma.vmem_to_hbm [thread:$0]  (%p2083_p2), %s1971_s24, 128, %s758_s10, %s746_s20  }
 0x407 PF: > { %s2084_s17 = sld [smem:[#allocation24_spill]]  ;;  %p1151_p4 = scmp.ge.s32.totalorder %s1561_s7, 2 }
 0x408   : > { %p2085_p10 = scmp.ne.s32.totalorder %s2067_s15, 0 }
 0x40a   : > { %p1137_p9 = pnand %p1151_p4, %p2085_p10 }
 0x40d   : > { %s772_s2 = sand.u32 1, %s2084_s17  }
 0x40e   : > { %s773_s1 = scalar_lea.sflag [#allocation9], %s772_s2 }
 0x40f   : > { %1516 = dma.done.wait (!%p1137_p9), %s773_s1, 128  }
 0x410   : > { %1518 = vsyncadd (!%p1137_p9), %s773_s1, 4294967168  ;;  %s25_s7 = sadd.s32 1, %s1561_s7   ;;  %s2086_s21 = smov %s1525_s22 }
 0x411   : > { %p22_p11 = scmp.ge.s32.totalorder %s25_s7, 6   ;;  %s2087_s22 = smov %s1529_s23 }
 0x412   : > { %s2088_s23 = smov %s1871_s12  ;;  %s2089_s24 = smov %s1537_s25 }
 0x413   : > { %s2090_s25 = smov %s1541_s26  ;;  %s2091_s26 = smov %s1874_s27 }
 0x414   : > { %s2092_s27 = smov %s1553_s29  ;;  %s2093_s28 = smov %s1557_s30 }
 0x415   : > { %s2094_s29 = smov %s2097_s14  ;;  %s2095_s30 = smov %s2101_s11 }
 0x416   :  { %24 = sbr.rel (!%p22_p11) target bundleno = 17 (0x11), region = 127 }
 0x41d   :  { %778 = vsyncpa [#allocation8], 1 }
 0x41e   :  { %780 = vsyncpa [#allocation8 + $0x1], 1 }
 0x41f   :  { %781 = vsyncpa [#allocation11], 1 }
 0x420   :  { %782 = vsyncpa [#allocation14], 1 }
 0x421   :  { %783 = vsyncpa [#allocation17], 1 }
 0x422   :  { %784 = vsyncpa [#allocation9], 1 }
 0x423   :  { %786 = vsyncpa [#allocation9 + $0x1], 1 }

</bundles_post_ra>
